<compile_context>
chip_gen: v6e
topology: v6e:2x2x1
jax: 0.10.0
libtpu: 0.0.40
codegen_flags: <defaults>
</compile_context>

<pallas_src>
import jax
import jax.numpy as jnp
from jax.experimental import pallas as pl
from jax.experimental.pallas import tpu as pltpu


def _normalize_kernel(scale_ref, bias_ref, x_ref, o_ref):
    # scale_ref, bias_ref: (tile_r, 1, 1) float32 blocks (per-row scalars)
    # x_ref, o_ref:        (tile_r, tile_inner, last) data tiles
    x = x_ref[...].astype(jnp.float32)
    o_ref[...] = (x * scale_ref[...] + bias_ref[...]).astype(o_ref.dtype)


def _round_up(a: int, b: int) -> int:
    return ((a + b - 1) // b) * b


def _divisors(n: int):
    divs = set()
    d = 1
    while d * d <= n:
        if n % d == 0:
            divs.add(d)
            divs.add(n // d)
        d += 1
    return sorted(divs)


def _best_divisor(n: int, limit: int, multiple_of: int = 1) -> int:
    """Largest divisor of n that is <= limit and a multiple of `multiple_of`.

    Falls back to the smallest qualifying divisor (or n itself) if none fits
    the limit.
    """
    best = None
    smallest = None
    for d in _divisors(n):
        if d % multiple_of == 0:
            if smallest is None:
                smallest = d
            if d <= limit:
                best = d
    if best is not None:
        return best
    return smallest if smallest is not None else n


def _ensure_multistep(tile_r: int, tile_inner: int, rows: int, inner: int):
    """v7x megacore: make at least one 'parallel' grid axis have >= 2 steps."""
    if rows // tile_r > 1 or inner // tile_inner > 1:
        return tile_r, tile_inner
    if tile_r % 2 == 0:
        return tile_r // 2, tile_inner
    if tile_inner % 16 == 0:  # halved tile stays a multiple of 8 and divides inner
        return tile_r, tile_inner // 2
    return tile_r, tile_inner


def _vmem_capacity_bytes() -> int:
    try:
        info = pltpu.get_tpu_info()
        return int(getattr(info, "vmem_capacity_bytes", 64 << 20))
    except Exception:
        return 64 << 20  # conservative (v7x-sized) fallback


def normalize_v2(x: jax.Array, mean: jax.Array, std: jax.Array,
                 out_dtype=None) -> jax.Array:
    """(x - mean) / std with mean/std broadcast over (1, C, 1, 1)."""
    N, C, H, W = x.shape
    R = N * C
    L = H * W

    if out_dtype is None:
        out_dtype = jnp.promote_types(x.dtype, jnp.float32)
        if out_dtype == jnp.dtype(jnp.float64):
            # TODO(synk): TPU has no native f64; compute/emit f32 instead.
            out_dtype = jnp.float32
    out_dtype = jnp.dtype(out_dtype)

    mean = mean.reshape(C).astype(jnp.float32)
    std = std.reshape(C).astype(jnp.float32)
    scale = 1.0 / std                       # (C,)
    bias = -mean * scale                    # (C,)
    # Per-row (row = n*C + c) scalars for the flattened (R, ...) view.
    scale_r = jnp.tile(scale, N).reshape(R, 1, 1)
    bias_r = jnp.tile(bias, N).reshape(R, 1, 1)

    # ---- choose the 3-D blocked view ------------------------------------
    if L % 128 == 0:
        inner, last = L // 128, 128         # unmasked 128-lane stores
    else:
        inner, last = H, W                  # full-W lane blocks (masked if W%128)
    x3 = x.reshape(R, inner, last)

    # ---- hardware-aware tile / VMEM budget -------------------------------
    in_itemsize = jnp.dtype(x.dtype).itemsize
    out_itemsize = out_dtype.itemsize
    elem_bytes = in_itemsize + out_itemsize          # in + out, per element
    vmem_cap = _vmem_capacity_bytes()
    # ~40 MiB working set on 64 MiB parts (v7x), ~64 MiB on 128 MiB parts.
    vmem_budget = min(vmem_cap * 5 // 8, 64 << 20)
    reserve = 2 << 20                                # scale/bias + compiler slack
    # Double-buffered in+out tiles must fit the budget; cap input tile ~16 MiB.
    max_tile_elems = min((vmem_budget - reserve) // (2 * elem_bytes),
                         (16 << 20) // in_itemsize)
    max_tile_elems = max(max_tile_elems, 8 * 128)

    # inner (sublane) tile: multiple of 8 dividing `inner`, or full `inner`.
    if inner % 8 == 0:
        tile_inner = _best_divisor(inner, max(max_tile_elems // last, 8), 8)
    else:
        tile_inner = inner
    # row tile: any divisor of R (leading dim has no alignment constraint).
    rows_budget = max(max_tile_elems // (tile_inner * last), 1)
    tile_r = _best_divisor(R, rows_budget, 1)

    tile_r, tile_inner = _ensure_multistep(tile_r, tile_inner, R, inner)
    grid = (R // tile_r, inner // tile_inner)   # inner axis last => scale/bias
                                                # blocks are not re-DMA'd per step

    # ---- VMEM limit: cover the tile, never clamp below it ----------------
    tile_elems = tile_r * tile_inner * last
    sb_bytes = 2 * 2 * _round_up(tile_r, 8) * 128 * 4  # scale+bias, dbl-buffered,
                                                       # padded (sublane x 128 lane)
    per_step_bytes = 2 * tile_elems * elem_bytes + sb_bytes
    vmem_limit = int(max(vmem_budget, min(per_step_bytes + (2 << 20), vmem_cap)))

    out3 = pl.pallas_call(
        _normalize_kernel,
        out_shape=jax.ShapeDtypeStruct((R, inner, last), out_dtype),
        grid=grid,
        in_specs=[
            pl.BlockSpec((tile_r, 1, 1), lambda i, j: (i, 0, 0)),          # scale
            pl.BlockSpec((tile_r, 1, 1), lambda i, j: (i, 0, 0)),          # bias
            pl.BlockSpec((tile_r, tile_inner, last), lambda i, j: (i, j, 0)),  # x
        ],
        out_specs=pl.BlockSpec((tile_r, tile_inner, last), lambda i, j: (i, j, 0)),
        compiler_params=pltpu.CompilerParams(
            dimension_semantics=("parallel", "parallel"),
            vmem_limit_bytes=vmem_limit,
        ),
    )(scale_r, bias_r, x3)

    return out3.reshape(N, C, H, W)


if __name__ == "__main__":
    # Module __init__ takes per-channel mean/std of length 3 (C == 3).
    mean = jnp.array([0.485, 0.456, 0.406], dtype=jnp.float32)
    std = jnp.array([0.229, 0.224, 0.225], dtype=jnp.float32)

    key = jax.random.PRNGKey(0)

    # Case 1: lane-dense path (H*W % 128 == 0).
    x = jax.random.uniform(key, (2, 3, 16, 16), dtype=jnp.float32)
    out = normalize_v2(x, mean, std)
    jax.block_until_ready(out)
    ref = (x - mean.reshape(1, 3, 1, 1)) / std.reshape(1, 3, 1, 1)
    assert out.shape == x.shape
    assert out.dtype == ref.dtype
    assert jnp.allclose(out, ref, atol=1e-5, rtol=1e-5)

    # Case 2: odd spatial size (H*W % 128 != 0) exercises the (R, H, W) path.
    x2 = jax.random.uniform(jax.random.PRNGKey(1), (1, 3, 9, 9), dtype=jnp.float32)
    out2 = normalize_v2(x2, mean, std)
    jax.block_until_ready(out2)
    ref2 = (x2 - mean.reshape(1, 3, 1, 1)) / std.reshape(1, 3, 1, 1)
    assert jnp.allclose(out2, ref2, atol=1e-5, rtol=1e-5)

    print("KERNEL_OK")
</pallas_src>

<mosaic_0001>
module attributes {stable_mosaic.version = 11 : i64} {
  func.func @_normalize_kernel(%arg0: i32, %arg1: i32, %arg2: memref<3x1x1xf32, #tpu.memory_space<vmem>>, %arg3: memref<3x1x1xf32, #tpu.memory_space<vmem>>, %arg4: memref<3x2x128xf32, #tpu.memory_space<vmem>>, %arg5: memref<3x2x128xf32, #tpu.memory_space<vmem>>) attributes {dimension_semantics = [#tpu.dimension_semantics<parallel>, #tpu.dimension_semantics<parallel>], iteration_bounds = array<i64: 2, 1>, scalar_prefetch = 0 : i64, scratch_operands = 0 : i64, tpu.core_type = #tpu.core_type<tc>, window_params = [{transform_indices = @transform_0, window_bounds = array<i64: 3, 1, 1>}, {transform_indices = @transform_1, window_bounds = array<i64: 3, 1, 1>}, {transform_indices = @transform_2, window_bounds = array<i64: 3, 2, 128>}, {transform_indices = @transform_3, window_bounds = array<i64: 3, 2, 128>}]} {
    %c0 = arith.constant 0 : index
    %c0_0 = arith.constant 0 : index
    %c0_1 = arith.constant 0 : index
    %0 = vector.load %arg4[%c0, %c0_0, %c0_1] : memref<3x2x128xf32, #tpu.memory_space<vmem>>, vector<3x2x128xf32>
    %c0_2 = arith.constant 0 : index
    %c0_3 = arith.constant 0 : index
    %c0_4 = arith.constant 0 : index
    %1 = vector.load %arg2[%c0_2, %c0_3, %c0_4] : memref<3x1x1xf32, #tpu.memory_space<vmem>>, vector<3x1x1xf32>
    %2 = vector.broadcast %1 : vector<3x1x1xf32> to vector<3x2x128xf32>
    %3 = arith.mulf %0, %2 : vector<3x2x128xf32>
    %c0_5 = arith.constant 0 : index
    %c0_6 = arith.constant 0 : index
    %c0_7 = arith.constant 0 : index
    %4 = vector.load %arg3[%c0_5, %c0_6, %c0_7] : memref<3x1x1xf32, #tpu.memory_space<vmem>>, vector<3x1x1xf32>
    %5 = vector.broadcast %4 : vector<3x1x1xf32> to vector<3x2x128xf32>
    %6 = arith.addf %3, %5 : vector<3x2x128xf32>
    %c0_8 = arith.constant 0 : index
    %c0_9 = arith.constant 0 : index
    %c0_10 = arith.constant 0 : index
    %7 = vector.load %arg5[%c0_8, %c0_9, %c0_10] : memref<3x2x128xf32, #tpu.memory_space<vmem>>, vector<3x2x128xf32>
    tpu.vector_store %arg5[%c0_8, %c0_9, %c0_10], %6 {strides = array<i32>} : memref<3x2x128xf32, #tpu.memory_space<vmem>>, vector<3x2x128xf32>,
    return
  }
  func.func @transform_0(%arg0: i32, %arg1: i32) -> (i32, i32, i32) {
    %c0_i32 = arith.constant 0 : i32
    %c0_i32_0 = arith.constant 0 : i32
    %c0_i32_1 = arith.constant 0 : i32
    return %arg0, %c0_i32, %c0_i32_0 : i32, i32, i32
  }
  func.func @transform_1(%arg0: i32, %arg1: i32) -> (i32, i32, i32) {
    %c0_i32 = arith.constant 0 : i32
    %c0_i32_0 = arith.constant 0 : i32
    %c0_i32_1 = arith.constant 0 : i32
    return %arg0, %c0_i32, %c0_i32_0 : i32, i32, i32
  }
  func.func @transform_2(%arg0: i32, %arg1: i32) -> (i32, i32, i32) {
    %c0_i32 = arith.constant 0 : i32
    %c0_i32_0 = arith.constant 0 : i32
    return %arg0, %arg1, %c0_i32 : i32, i32, i32
  }
  func.func @transform_3(%arg0: i32, %arg1: i32) -> (i32, i32, i32) {
    %c0_i32 = arith.constant 0 : i32
    %c0_i32_0 = arith.constant 0 : i32
    return %arg0, %arg1, %c0_i32 : i32, i32, i32
  }
}

</mosaic_0001>

<bundles_post_ra>
// kernel: tpu_custom_call.1
= control target key start
LH: loop header
LB: loop body
LE: loop exit
PB: predicated region body
PF: predicated region fallthrough
CT: control target
= control target key end

     0   :  { %8 = vsyncpa [#allocation3], 0  ;;  %s713_s0 = inlined_call_operand.vmem [shape: f32[6,1,1], index: 0, kind: input, shape index: {}]   ;;  %s714_s1 = inlined_call_operand.vmem [shape: f32[6,1,1], index: 1, kind: input, shape index: {}]   ;;  %s715_s2 = inlined_call_operand.vmem [shape: f32[6,2,128], index: 2, kind: input, shape index: {}]   ;;  %s716_s3 = inlined_call_operand.hbm [shape: f32[6,2,128], index: 3, kind: output, shape index: {}]  }
   0x1   :  { %10 = vsyncpa [#allocation3 + $0x1], 0  ;;  %s594_s12 = smov 0   ;;  %s596_s13 = smov 0  }
   0x2   :  { %s598_s14 = smov 0   ;;  %s600_s15 = smov 0  }
   0x3   :  { %s602_s16 = smov 0   ;;  %s604_s17 = smov 0  }
   0x4 LB: > { %s415_s18 = sadd.s32 4294967295, %s568_s17   ;;  %s416_s19 = sadd.s32 4294967294, %s568_s17   ;;  %s568_s17 = sphi %s604_s17, %s16_s17   ;;  %s564_s16 = sphi %s602_s16, %s723_s16   ;;  %s560_s15 = sphi %s600_s15, %s722_s15   ;;  %s556_s14 = sphi %s598_s14, %s721_s14   ;;  %s552_s13 = sphi %s596_s13, %s720_s13   ;;  %s548_s12 = sphi %s594_s12, %s719_s12  }
   0x5   : > { %s28_s20 = sadd.s32 1, %s564_s16  ;;  %s117_s21 = sadd.s32 1, %s556_s14 }
   0x6   : > { %p30_p0 = scmp.ge.s32.totalorder %s28_s20, 2  ;;  %p127_p1 = scmp.ne.s32.totalorder %s556_s14, %s552_s13 }
   0x7   : > { %p128_p2 = scmp.eq.s32.totalorder %s415_s18, 1  ;;  %p133_p3 = scmp.ne.s32.totalorder %s552_s13, %s548_s12 }
   0x8   : > { %s725_s20 = smov (%p30_p0, %s28_s20), 0  ;;  %p134_p5 = scmp.eq.s32.totalorder %s416_s19, 1 }
   0x9   : > { %p634_p4 = por %p128_p2, %p127_p1  ;;  %s112_s23 = ssub.s32 %s564_s16, %s725_s20 }
   0xa   : > { %p419_p6 = scmp.ge.s32.totalorder %s568_s17, 1  ;;  %p115_p7 = scmp.eq.s32.totalorder %s112_s23, 0 }
   0xb   : > { %p641_p8 = por %p134_p5, %p133_p3  ;;  %p180_p9 = scmp.lt.s32.totalorder %s568_s17, 3 }
   0xc   : > { %s647_s25 = scalar_select %p115_p7, %s556_s14, %s117_s21  }
   0xd   : > { %p181_p10 = pnand %p419_p6, %p180_p9 }
   0xe   : > { %s215_s26 = smul.u32 (!%p181_p10), 3, %s560_s15  ;;  %s212_s10 = sand.u32 (!%p181_p10), 1, %s552_s13  }
   0xf   : > { %184 = sbr.rel (%p181_p10) target bundleno = 171 (0xab), region = 32 }
  0x10   : > { %p216_p11 = scmp.lt.s32.totalorder (!%p181_p10), %s215_s26, 5  ;;  %s431_s11 = smul.u32 (!%p181_p10), 6, %s212_s10 }
  0x11   : > { %s430_s18 = smul.u32 (!%p181_p10), 96, %s560_s15  ;;  %s668_s15 = scalar_lea.sflag (!%p181_p10), [#allocation3], %s212_s10 }
  0x12   : > { %s214_s19 = scalar_lea.vmem (!%p181_p10), [#allocation2], %s431_s11 }
  0x13   : > { %s322_s21 = sshll.u32 (!%p181_p10), %s214_s19, 4  ;;  %s666_s27 = scalar_lea.hbm (!%p181_p10), %s716_s3, %s430_s18  ;;  %s661_s21 = int_to_ptr.vmem [resolvable:$true] %s322_s21 }
  0x14   : > { %v570_v0 = vmov 0   ;;  %s727_s26 = smov (!%p216_p11, %s215_s26), 5  ;;  %s492_s28 = scalar_lea.vmem %s661_s21, 96 }
  0x15   : > { %491 = vset.pattern.permute.xlu1 %v570_v0  ;;  %490 = vset.pattern.permute.xlu0 %v570_v0  ;;  %s218_s29 = scalar_lea.vmem %s713_s0, %s727_s26  ;;  %s223_s5 = scalar_lea.vmem %s714_s1, %s727_s26 }
  0x16   : > { %v423_v1 = vld [vmem:[%s218_s29 + $0x2] ss:$0 sm:$0xff]  ;;  %v421_v2 = vld [vmem:[%s218_s29] ss:$0 sm:$0xff]  ;;  %v422_v4 = vld [vmem:[%s218_s29 + $0x1] ss:$0 sm:$0xff]  ;;  %p493_p12 = scmp.ne.s32.totalorder %s661_s21, %s492_s28 }
  0x17   : > { %265 = vperm.xlu1 %491, %v423_v1   ;;  %257 = vperm.xlu0 %490, %v421_v2   ;;  %v424_v3 = vld [vmem:[%s223_s5] ss:$0 sm:$0xff]  ;;  %v426_v5 = vld [vmem:[%s223_s5 + $0x2] ss:$0 sm:$0xff]  ;;  %v425_v6 = vld [vmem:[%s223_s5 + $0x1] ss:$0 sm:$0xff] }
  0x18   : > { %s420_s6 = sshll.u32 %s727_s26, 1  ;;  %p494_p13 = pnand %p493_p12, %p634_p4 }
  0x19   : > { %s232_s9 = scalar_lea.vmem %s715_s2, %s420_s6  ;;  %s571_s29 = smov [#allocation2]  }
  0x1a   : > { %v235_v8 = vld [vmem:[%s232_s9] sm:$0x3]  ;;  %v237_v11 = vld [vmem:[%s232_s9 + $0x4] sm:$0x3]  ;;  %v236_v13 = vld [vmem:[%s232_s9 + $0x2] sm:$0x3]  ;;  %p495_p0 = pneg %p494_p13 }
  0x1b   : > { %290 = vperm.xlu1 %491, %v424_v3   ;;  %261 = vperm.xlu0 %490, %v422_v4   ;;  %s496_s30 = sshll.u32 %s571_s29, 4  ;;  %s497_s30 = int_to_ptr.vmem [resolvable:$false] %s496_s30 }
  0x1c   : > { %s498_s4 = scalar_lea.vmem %s497_s30, 192  ;;  %p499_p1 = scmp.lt.s32.totalorder %s661_s21, %s497_s30 }
  0x1d   : > { %p500_p2 = scmp.lt.s32.totalorder %s498_s4, %s492_s28 }
  0x1f   : > { %298 = vperm.xlu1 %491, %v426_v5   ;;  %294 = vperm.xlu0 %490, %v425_v6   ;;  %p501_p3 = por %p500_p2, %p499_p1 }
  0x21   : > { %p502_p5 = pnand %p501_p3, %p495_p0 }
  0x92   : > { %v266_v7 = vpop.permute.xlu1 %265  ;;  %v258_v9 = vpop.permute.xlu0 %257 }
  0x93   : > { %v268_v10 = vmul.f32 %v258_v9, %v235_v8  ;;  %v270_v16 = vmul.f32 %v266_v7, %v237_v11 }
  0x96   : > { %v291_v12 = vpop.permute.xlu1 %290  ;;  %v262_v14 = vpop.permute.xlu0 %261 }
  0x97   : > { %v301_v15 = vadd.f32 %v291_v12, %v268_v10  ;;  %v269_v17 = vmul.f32 %v262_v14, %v236_v13 }
  0x99   : > { %304 = vst [vmem:[%s214_s19] sm:$0x3] %v301_v15 }
  0x9a   : > { %v299_v18 = vpop.permute.xlu1 %298  ;;  %v295_v19 = vpop.permute.xlu0 %294 }
  0x9b   : > { %v303_v20 = vadd.f32 %v299_v18, %v270_v16  ;;  %v302_v21 = vadd.f32 %v295_v19, %v269_v17 }
  0x9d   : > { %306 = vst [vmem:[%s214_s19 + $0x4] sm:$0x3] %v303_v20  ;;  %305 = vst [vmem:[%s214_s19 + $0x2] sm:$0x3] %v302_v21 }
  0x9e   : > { %505 = shalt.err (!%p502_p5)
}
  0x9f   : > { %s506_s5 = scalar_lea.hbm %s666_s27, 96  ;;  %s510_s8 = scalar_lea.hbm %s716_s3, 192 }
  0xa0   : > { %p507_p6 = scmp.ne.s32.totalorder %s666_s27, %s506_s5  ;;  %p511_p10 = scmp.lt.s32.totalorder %s666_s27, %s716_s3 }
  0xa1   : > { %p512_p11 = scmp.lt.s32.totalorder %s510_s8, %s506_s5 }
  0xa2   : > { %p508_p7 = pnand %p507_p6, %p634_p4 }
  0xa3   : > { %p513_p12 = por %p512_p11, %p511_p10 }
  0xa4   : > { %p509_p9 = pneg %p508_p7 }
  0xa6   : > { %p514_p13 = pnand %p513_p12, %p509_p9 }
  0xa8   : > { %517 = shalt.err (!%p514_p13)
}
  0xa9   : > { %s572_s11 = smov 32   ;;  %s573_s18 = smov 2  }
  0xaa   : > { %432 = dma.vmem_to_hbm [thread:$0]  (%p634_p4), %s661_s21, 96, %s666_s27, %s668_s15, %s572_s11, %s572_s11, %s573_s18  }
  0xab PF: > { %p438_p0 = scmp.ge.s32.totalorder %s568_s17, 2  ;;  %s337_s19 = sand.u32 1, %s548_s12  }
  0xac   : > { %s338_s23 = scalar_lea.sflag [#allocation3], %s337_s19 }
  0xad   : > { %p435_p1 = pnand %p438_p0, %p641_p8 }
  0xaf   : > { %p436_p2 = pneg %p435_p1 }
  0xb1   : > { %543 = dma.done.wait (%p436_p2), %s338_s23, 96  }
  0xb2   : > { %545 = vsyncadd (%p436_p2), %s338_s23, 4294967200  ;;  %s16_s17 = sadd.s32 1, %s568_s17   ;;  %s719_s12 = smov %s552_s13 }
  0xb3   : > { %p13_p3 = scmp.ge.s32.totalorder %s16_s17, 4   ;;  %s720_s13 = smov %s556_s14 }
  0xb4   : > { %s721_s14 = smov %s647_s25  ;;  %s722_s15 = smov %s564_s16 }
  0xb5   : > { %s723_s16 = smov %s725_s20  ;;  %15 = sbr.rel (!%p13_p3) target bundleno = 4 (0x4), region = 73 }
  0xba   :  { %343 = vsyncpa [#allocation3], 1 }
  0xbb   :  { %345 = vsyncpa [#allocation3 + $0x1], 1 }

</bundles_post_ra>
